<compile_context>
chip_gen: v6e
topology: v6e:2x2x1
jax: 0.10.0
libtpu: 0.0.40
codegen_flags: <defaults>
</compile_context>

<pallas_src>
import functools

import jax
import jax.numpy as jnp
from jax.experimental import pallas as pl
from jax.experimental.pallas import tpu as pltpu

LANES = 128


def _focal_heat_kernel(out_ref, tgt_ref,
                       loss_out_ref, npos_out_ref,
                       loss_acc, npos_acc,
                       *, alpha, beta, rows, block_rows):
    o_idx = pl.program_id(0)          # parallel (megacore) axis
    i_idx = pl.program_id(1)          # sequential reduction axis
    n_inner = pl.num_programs(1)

    # (Re)initialize the per-outer accumulators at the start of each outer slice.
    @pl.when(i_idx == 0)
    def _():
        loss_acc[...] = jnp.zeros_like(loss_acc)
        npos_acc[...] = jnp.zeros_like(npos_acc)

    # Row-level validity only.  Lane padding was filled with (output=0,
    # target=0) in the wrapper, which contributes exactly zero, so only rows
    # past the true row count (tail of the last block and duplicated clamped
    # blocks) must be masked out.  Cost: one (br,1) iota + compare, and one
    # broadcasted select per accumulated quantity.
    blk = o_idx * n_inner + i_idx
    row_ids = jax.lax.broadcasted_iota(jnp.int32, (block_rows, 1), 0)
    row_valid = (blk * block_rows + row_ids) < rows           # (br, 1) bool

    o = out_ref[...].astype(jnp.float32)
    t = tgt_ref[...].astype(jnp.float32)

    is_pos = t == 1.0
    is_neg = t < 1.0
    one_minus_o = 1.0 - o

    # Single EUP log per element: log(o) for positives, log(1-o) for negatives.
    s = jnp.where(is_pos, o, one_minus_o)
    log_s = jnp.log(s)
    # (1-o)^alpha for positives, o^alpha for negatives (alpha/beta are Python
    # ints -> integer_pow -> VPU multiplies, no extra EUP work).
    p = jnp.where(is_pos, one_minus_o, o)
    term = log_s * (p ** alpha)
    neg_term = term * ((1.0 - t) ** beta)

    # Merged contribution: pos_loss where t==1, neg_loss where t<1, else 0.
    # NaNs from log of garbage (stale VMEM in masked-out rows) are removed by
    # the select, never by a multiply.
    contrib = jnp.where(is_pos, term, jnp.where(is_neg, neg_term,
                                                jnp.float32(0.0)))
    contrib = jnp.where(row_valid, contrib, jnp.float32(0.0))
    npos = jnp.where(jnp.logical_and(is_pos, row_valid),
                     jnp.float32(1.0), jnp.float32(0.0))

    # Reduce (block_rows, 128) -> (8, 128) with VPU adds only (the reshape is
    # exactly (8,128)-tile aligned, hence free), then accumulate into scratch.
    g = block_rows // 8
    loss_acc[...] += contrib.reshape(g, 8, LANES).sum(axis=0)
    npos_acc[...] += npos.reshape(g, 8, LANES).sum(axis=0)

    # Dump lane-dense (8,128) partials once per outer slice; the final scalar
    # reduction happens in the JAX wrapper.
    @pl.when(i_idx == n_inner - 1)
    def _():
        loss_out_ref[0] = loss_acc[...]
        npos_out_ref[0] = npos_acc[...]


def focal_heat_loss(output, target, *, alpha=2, beta=4, loss_weight=1.0,
                    block_rows=2048):
    """Pallas implementation of FocalHeatLoss.forward.

    output, target: [B, K, H, W] heatmaps. `output` is expected strictly in
    (0, 1) for finite log terms (exactly as the PyTorch reference requires).
    Inputs are streamed in their native dtype and cast to f32 inside the kernel.
    """
    assert output.shape == target.shape
    total = int(output.size)

    out_flat = output.reshape(-1)
    tgt_flat = target.reshape(-1)

    # Pad only to a LANES multiple (usually pad == 0 since H*W is typically a
    # multiple of 128).  Padding with (output=0, target=0) contributes exactly
    # zero loss and zero positives, so no lane-level mask is needed in-kernel.
    pad = (-total) % LANES
    if pad:
        out_flat = jnp.pad(out_flat, (0, pad))
        tgt_flat = jnp.pad(tgt_flat, (0, pad))
    rows = (total + pad) // LANES

    out2 = out_flat.reshape(rows, LANES)
    tgt2 = tgt_flat.reshape(rows, LANES)

    # Block rows: multiple of 8 (sublane tile), no larger than needed.
    br = max(8, min(int(block_rows), ((rows + 7) // 8) * 8))
    br = (br // 8) * 8
    n_blocks = pl.cdiv(rows, br)
    n_outer = 2 if n_blocks >= 2 else 1     # v7x: one slice per TensorCore
    n_inner = pl.cdiv(n_blocks, n_outer)

    def in_map(o, i):
        # Clamp so duplicated trailing blocks (when n_outer*n_inner > n_blocks)
        # re-read the last block; their rows all fail the in-kernel row mask.
        return (jnp.minimum(o * n_inner + i, n_blocks - 1), 0)

    tile_spec = pl.BlockSpec((br, LANES), in_map)
    part_spec = pl.BlockSpec((1, 8, LANES), lambda o, i: (o, 0, 0))
    part_shape = jax.ShapeDtypeStruct((n_outer, 8, LANES), jnp.float32)

    kernel = functools.partial(_focal_heat_kernel, alpha=alpha, beta=beta,
                               rows=rows, block_rows=br)

    loss_p, npos_p = pl.pallas_call(
        kernel,
        out_shape=(part_shape, part_shape),
        grid_spec=pltpu.PrefetchScalarGridSpec(
            num_scalar_prefetch=0,
            grid=(n_outer, n_inner),
            in_specs=[tile_spec, tile_spec],
            out_specs=(part_spec, part_spec),
            scratch_shapes=[pltpu.VMEM((8, LANES), jnp.float32)] * 2,
        ),
        compiler_params=pltpu.CompilerParams(
            dimension_semantics=("parallel", "arbitrary")),
    )(out2, tgt2)

    loss_sum = jnp.sum(loss_p)     # = pos_loss.sum() + neg_loss.sum()
    num_pos = jnp.sum(npos_p)

    # if num_pos == 0: loss = -neg_sum (pos_sum is 0)  else: loss = -sum/num_pos
    safe_den = jnp.where(num_pos == 0, jnp.float32(1.0), num_pos)
    loss = jnp.where(num_pos == 0, -loss_sum, -loss_sum / safe_den)
    return loss * loss_weight


def _reference_focal_heat_loss(output, target, alpha=2, beta=4, loss_weight=1.0):
    output = output.astype(jnp.float32)
    target = target.astype(jnp.float32)
    pos_inds = (target == 1.0).astype(jnp.float32)
    neg_inds = (target < 1.0).astype(jnp.float32)
    neg_weights = (1.0 - target) ** beta
    pos_loss = jnp.log(output) * (1.0 - output) ** alpha * pos_inds
    neg_loss = jnp.log(1.0 - output) * output ** alpha * neg_weights * neg_inds
    num_pos = pos_inds.sum()
    loss = jnp.where(num_pos == 0,
                     -neg_loss.sum(),
                     -(pos_loss.sum() + neg_loss.sum())
                     / jnp.where(num_pos == 0, 1.0, num_pos))
    return loss * loss_weight


if __name__ == "__main__":
    key = jax.random.PRNGKey(0)
    k_out, k_tgt, k_pos = jax.random.split(key, 3)

    B, K, H, W = 2, 4, 16, 16   # [B, K, H, W] NCHW-style heatmaps

    # Predicted heatmap strictly in (0, 1) (as required by the loss's log terms).
    output = jax.nn.sigmoid(jax.random.normal(k_out, (B, K, H, W), jnp.float32))
    # Target heatmap in [0, 1) with a few exact 1.0 "keypoint peaks".
    target = jax.random.uniform(k_tgt, (B, K, H, W), jnp.float32, 0.0, 0.95)
    peaks = jax.random.uniform(k_pos, (B, K, H, W)) > 0.98
    target = jnp.where(peaks, 1.0, target)

    loss = focal_heat_loss(output, target, alpha=2, beta=4, loss_weight=1.0)
    loss = jax.block_until_ready(loss)

    ref = _reference_focal_heat_loss(output, target)
    assert jnp.allclose(loss, ref, rtol=1e-5, atol=1e-5), (loss, ref)

    print("KERNEL_OK")
</pallas_src>

<mosaic_0001>
module attributes {stable_mosaic.version = 11 : i64} {
  func.func @_focal_heat_kernel(%arg0: i32, %arg1: i32, %arg2: memref<16x128xf32, #tpu.memory_space<vmem>>, %arg3: memref<16x128xf32, #tpu.memory_space<vmem>>, %arg4: memref<1x8x128xf32, #tpu.memory_space<vmem>>, %arg5: memref<1x8x128xf32, #tpu.memory_space<vmem>>, %arg6: memref<8x128xf32, #tpu.memory_space<vmem>>, %arg7: memref<8x128xf32, #tpu.memory_space<vmem>>) attributes {dimension_semantics = [#tpu.dimension_semantics<parallel>, #tpu.dimension_semantics<arbitrary>], iteration_bounds = array<i64: 1, 1>, scalar_prefetch = 0 : i64, scratch_operands = 2 : i64, tpu.core_type = #tpu.core_type<tc>, window_params = [{transform_indices = @transform_0, window_bounds = array<i64: 16, 128>}, {transform_indices = @transform_1, window_bounds = array<i64: 16, 128>}, {transform_indices = @transform_2, window_bounds = array<i64: 1, 8, 128>}, {transform_indices = @transform_3, window_bounds = array<i64: 1, 8, 128>}]} {
    %c0_i32 = arith.constant 0 : i32
    %0 = arith.cmpi eq, %arg1, %c0_i32 : i32
    %1 = arith.extui %0 : i1 to i32
    %c0_i32_0 = arith.constant 0 : i32
    %2 = arith.cmpi ne, %1, %c0_i32_0 : i32
    scf.if %2 {
      %cst_24 = arith.constant 0.000000e+00 : f32
      %54 = vector.broadcast %cst_24 : f32 to vector<8x128xf32>
      %c0_25 = arith.constant 0 : index
      %c0_26 = arith.constant 0 : index
      %55 = vector.load %arg6[%c0_25, %c0_26] : memref<8x128xf32, #tpu.memory_space<vmem>>, vector<8x128xf32>
      tpu.vector_store %arg6[%c0_25, %c0_26], %54 {strides = array<i32>} : memref<8x128xf32, #tpu.memory_space<vmem>>, vector<8x128xf32>,
      %cst_27 = arith.constant 0.000000e+00 : f32
      %56 = vector.broadcast %cst_27 : f32 to vector<8x128xf32>
      %c0_28 = arith.constant 0 : index
      %c0_29 = arith.constant 0 : index
      %57 = vector.load %arg7[%c0_28, %c0_29] : memref<8x128xf32, #tpu.memory_space<vmem>>, vector<8x128xf32>
      tpu.vector_store %arg7[%c0_28, %c0_29], %56 {strides = array<i32>} : memref<8x128xf32, #tpu.memory_space<vmem>>, vector<8x128xf32>,
    } else {
    }
    %c1_i32 = arith.constant 1 : i32
    %3 = arith.muli %arg0, %c1_i32 : i32
    %4 = arith.addi %3, %arg1 : i32
    %5 = tpu.iota {dimensions = array<i32: 0>} : vector<16x1xi32>
    %c16_i32 = arith.constant 16 : i32
    %6 = arith.muli %4, %c16_i32 : i32
    %7 = vector.broadcast %6 : i32 to vector<16x1xi32>
    %8 = arith.addi %7, %5 : vector<16x1xi32>
    %c16_i32_1 = arith.constant 16 : i32
    %9 = vector.broadcast %c16_i32_1 : i32 to vector<16x1xi32>
    %10 = arith.cmpi slt, %8, %9 : vector<16x1xi32>
    %c0 = arith.constant 0 : index
    %c0_2 = arith.constant 0 : index
    %11 = vector.load %arg2[%c0, %c0_2] : memref<16x128xf32, #tpu.memory_space<vmem>>, vector<16x128xf32>
    %c0_3 = arith.constant 0 : index
    %c0_4 = arith.constant 0 : index
    %12 = vector.load %arg3[%c0_3, %c0_4] : memref<16x128xf32, #tpu.memory_space<vmem>>, vector<16x128xf32>
    %cst = arith.constant 1.000000e+00 : f32
    %13 = vector.broadcast %cst : f32 to vector<16x128xf32>
    %14 = arith.cmpf oeq, %12, %13 : vector<16x128xf32>
    %cst_5 = arith.constant 1.000000e+00 : f32
    %15 = vector.broadcast %cst_5 : f32 to vector<16x128xf32>
    %16 = arith.cmpf olt, %12, %15 : vector<16x128xf32>
    %cst_6 = arith.constant 1.000000e+00 : f32
    %17 = vector.broadcast %cst_6 : f32 to vector<16x128xf32>
    %18 = arith.subf %17, %11 : vector<16x128xf32>
    %19 = arith.select %14, %11, %18 : vector<16x128xi1>, vector<16x128xf32>
    %20 = math.log %19 : vector<16x128xf32>
    %21 = arith.select %14, %18, %11 : vector<16x128xi1>, vector<16x128xf32>
    %22 = arith.mulf %21, %21 : vector<16x128xf32>
    %23 = arith.mulf %20, %22 : vector<16x128xf32>
    %cst_7 = arith.constant 1.000000e+00 : f32
    %24 = vector.broadcast %cst_7 : f32 to vector<16x128xf32>
    %25 = arith.subf %24, %12 : vector<16x128xf32>
    %26 = arith.mulf %25, %25 : vector<16x128xf32>
    %27 = arith.mulf %26, %26 : vector<16x128xf32>
    %28 = arith.mulf %23, %27 : vector<16x128xf32>
    %cst_8 = arith.constant 0.000000e+00 : f32
    %29 = vector.broadcast %cst_8 : f32 to vector<16x128xf32>
    %30 = arith.select %16, %28, %29 : vector<16x128xi1>, vector<16x128xf32>
    %31 = arith.select %14, %23, %30 : vector<16x128xi1>, vector<16x128xf32>
    %cst_9 = arith.constant 0.000000e+00 : f32
    %32 = vector.shape_cast %10 : vector<16x1xi1> to vector<16x1xi1>
    %33 = vector.broadcast %32 : vector<16x1xi1> to vector<16x128xi1>
    %34 = vector.broadcast %cst_9 : f32 to vector<16x128xf32>
    %35 = arith.select %33, %31, %34 : vector<16x128xi1>, vector<16x128xf32>
    %36 = vector.broadcast %10 : vector<16x1xi1> to vector<16x128xi1>
    %37 = arith.andi %14, %36 : vector<16x128xi1>
    %cst_10 = arith.constant 1.000000e+00 : f32
    %cst_11 = arith.constant 0.000000e+00 : f32
    %38 = vector.broadcast %cst_10 : f32 to vector<16x128xf32>
    %39 = vector.broadcast %cst_11 : f32 to vector<16x128xf32>
    %40 = arith.select %37, %38, %39 : vector<16x128xi1>, vector<16x128xf32>
    %c0_12 = arith.constant 0 : index
    %c0_13 = arith.constant 0 : index
    %41 = vector.load %arg6[%c0_12, %c0_13] : memref<8x128xf32, #tpu.memory_space<vmem>>, vector<8x128xf32>
    %42 = vector.shape_cast %35 : vector<16x128xf32> to vector<2x8x128xf32>
    %cst_14 = arith.constant dense<0.000000e+00> : vector<8x128xf32>
    %43 = vector.multi_reduction <add>, %42, %cst_14 [0] : vector<2x8x128xf32> to vector<8x128xf32>
    %44 = arith.addf %41, %43 : vector<8x128xf32>
    %c0_15 = arith.constant 0 : index
    %c0_16 = arith.constant 0 : index
    %45 = vector.load %arg6[%c0_15, %c0_16] : memref<8x128xf32, #tpu.memory_space<vmem>>, vector<8x128xf32>
    tpu.vector_store %arg6[%c0_15, %c0_16], %44 {strides = array<i32>} : memref<8x128xf32, #tpu.memory_space<vmem>>, vector<8x128xf32>,
    %c0_17 = arith.constant 0 : index
    %c0_18 = arith.constant 0 : index
    %46 = vector.load %arg7[%c0_17, %c0_18] : memref<8x128xf32, #tpu.memory_space<vmem>>, vector<8x128xf32>
    %47 = vector.shape_cast %40 : vector<16x128xf32> to vector<2x8x128xf32>
    %cst_19 = arith.constant dense<0.000000e+00> : vector<8x128xf32>
    %48 = vector.multi_reduction <add>, %47, %cst_19 [0] : vector<2x8x128xf32> to vector<8x128xf32>
    %49 = arith.addf %46, %48 : vector<8x128xf32>
    %c0_20 = arith.constant 0 : index
    %c0_21 = arith.constant 0 : index
    %50 = vector.load %arg7[%c0_20, %c0_21] : memref<8x128xf32, #tpu.memory_space<vmem>>, vector<8x128xf32>
    tpu.vector_store %arg7[%c0_20, %c0_21], %49 {strides = array<i32>} : memref<8x128xf32, #tpu.memory_space<vmem>>, vector<8x128xf32>,
    %c0_i32_22 = arith.constant 0 : i32
    %51 = arith.cmpi eq, %arg1, %c0_i32_22 : i32
    %52 = arith.extui %51 : i1 to i32
    %c0_i32_23 = arith.constant 0 : i32
    %53 = arith.cmpi ne, %52, %c0_i32_23 : i32
    scf.if %53 {
      %c0_24 = arith.constant 0 : index
      %c0_25 = arith.constant 0 : index
      %54 = vector.load %arg6[%c0_24, %c0_25] : memref<8x128xf32, #tpu.memory_space<vmem>>, vector<8x128xf32>
      %c0_26 = arith.constant 0 : index
      %c0_27 = arith.constant 0 : index
      %c0_28 = arith.constant 0 : index
      %55 = vector.load %arg4[%c0_26, %c0_27, %c0_28] : memref<1x8x128xf32, #tpu.memory_space<vmem>>, vector<1x8x128xf32>
      %56 = vector.shape_cast %55 : vector<1x8x128xf32> to vector<8x128xf32>
      %57 = vector.shape_cast %54 : vector<8x128xf32> to vector<1x8x128xf32>
      tpu.vector_store %arg4[%c0_26, %c0_27, %c0_28], %57 {strides = array<i32>} : memref<1x8x128xf32, #tpu.memory_space<vmem>>, vector<1x8x128xf32>,
      %c0_29 = arith.constant 0 : index
      %c0_30 = arith.constant 0 : index
      %58 = vector.load %arg7[%c0_29, %c0_30] : memref<8x128xf32, #tpu.memory_space<vmem>>, vector<8x128xf32>
      %c0_31 = arith.constant 0 : index
      %c0_32 = arith.constant 0 : index
      %c0_33 = arith.constant 0 : index
      %59 = vector.load %arg5[%c0_31, %c0_32, %c0_33] : memref<1x8x128xf32, #tpu.memory_space<vmem>>, vector<1x8x128xf32>
      %60 = vector.shape_cast %59 : vector<1x8x128xf32> to vector<8x128xf32>
      %61 = vector.shape_cast %58 : vector<8x128xf32> to vector<1x8x128xf32>
      tpu.vector_store %arg5[%c0_31, %c0_32, %c0_33], %61 {strides = array<i32>} : memref<1x8x128xf32, #tpu.memory_space<vmem>>, vector<1x8x128xf32>,
    } else {
    }
    return
  }
  func.func @transform_0(%arg0: i32, %arg1: i32) -> (i32, i32) {
    %c1_i32 = arith.constant 1 : i32
    %0 = arith.muli %arg0, %c1_i32 : i32
    %1 = arith.addi %0, %arg1 : i32
    %c0_i32 = arith.constant 0 : i32
    %2 = arith.minsi %1, %c0_i32 : i32
    %c0_i32_0 = arith.constant 0 : i32
    %c0_i32_1 = arith.constant 0 : i32
    return %2, %c0_i32_0 : i32, i32
  }
  func.func @transform_1(%arg0: i32, %arg1: i32) -> (i32, i32) {
    %c1_i32 = arith.constant 1 : i32
    %0 = arith.muli %arg0, %c1_i32 : i32
    %1 = arith.addi %0, %arg1 : i32
    %c0_i32 = arith.constant 0 : i32
    %2 = arith.minsi %1, %c0_i32 : i32
    %c0_i32_0 = arith.constant 0 : i32
    %c0_i32_1 = arith.constant 0 : i32
    return %2, %c0_i32_0 : i32, i32
  }
  func.func @transform_2(%arg0: i32, %arg1: i32) -> (i32, i32, i32) {
    %c0_i32 = arith.constant 0 : i32
    %c0_i32_0 = arith.constant 0 : i32
    %c0_i32_1 = arith.constant 0 : i32
    return %arg0, %c0_i32, %c0_i32_0 : i32, i32, i32
  }
  func.func @transform_3(%arg0: i32, %arg1: i32) -> (i32, i32, i32) {
    %c0_i32 = arith.constant 0 : i32
    %c0_i32_0 = arith.constant 0 : i32
    %c0_i32_1 = arith.constant 0 : i32
    return %arg0, %c0_i32, %c0_i32_0 : i32, i32, i32
  }
}

</mosaic_0001>

<bundles_post_ra>
// kernel: tpu_custom_call.1
= control target key start
LH: loop header
LB: loop body
LE: loop exit
PB: predicated region body
PF: predicated region fallthrough
CT: control target
= control target key end

     0   :  { %9 = vsyncpa [#allocation5], 0  ;;  %s318_s0 = inlined_call_operand.hbm [shape: f32[16,128], index: 0, kind: input, shape index: {}]   ;;  %s319_s1 = inlined_call_operand.hbm [shape: f32[16,128], index: 1, kind: input, shape index: {}]   ;;  %s320_s2 = inlined_call_operand.hbm [shape: f32[1,8,128], index: 2, kind: output, shape index: {0}]   ;;  %s321_s3 = inlined_call_operand.hbm [shape: f32[1,8,128], index: 3, kind: output, shape index: {1}]  }
   0x1   :  { %10 = vsyncpa [#allocation8], 0 }
   0x2   :  { %11 = vsyncpa [#allocation6], 0 }
   0x3   :  { %12 = vsyncpa [#allocation11], 0  ;;  %s271_s12 = smov [#allocation4]  }
   0x4   :  { %s24_s13 = sshll.u32 %s271_s12, 4  ;;  %s25_s13 = int_to_ptr.vmem [resolvable:$true] %s24_s13 }
   0x5   :  { %s191_s14 = scalar_lea.vmem %s25_s13, 256  ;;  %p196_p1 = scmp.lt.s32.totalorder %s25_s13, %s25_s13 }
   0x6   :  { %p192_p0 = scmp.ne.s32.totalorder %s25_s13, %s191_s14  ;;  %p197_p2 = scmp.lt.s32.totalorder %s191_s14, %s191_s14 }
   0x8   :  { %p198_p3 = por %p197_p2, %p196_p1 }
   0xa   :  { %p199_p4 = pnand %p198_p3, %p192_p0 }
   0xc   :  { %202 = shalt.err (!%p199_p4)
}
   0xd   :  { %s272_s15 = smov 128   ;;  %s273_s16 = smov 8  }
   0xe   :  { %30 = dma.hbm_to_vmem [thread:$0]  %s318_s0, 256, %s25_s13, [#allocation5], %s272_s15, %s272_s15, %s273_s16  }
   0xf   :  { %s274_s19 = smov [#allocation7]  }
  0x10   :  { %s42_s20 = sshll.u32 %s274_s19, 4  ;;  %s43_s20 = int_to_ptr.vmem [resolvable:$true] %s42_s20 }
  0x11   :  { %s211_s21 = scalar_lea.vmem %s43_s20, 256  ;;  %p216_p6 = scmp.lt.s32.totalorder %s43_s20, %s43_s20 }
  0x12   :  { %p212_p5 = scmp.ne.s32.totalorder %s43_s20, %s211_s21  ;;  %p217_p7 = scmp.lt.s32.totalorder %s211_s21, %s211_s21 }
  0x14   :  { %p218_p8 = por %p217_p7, %p216_p6 }
  0x16   :  { %p219_p9 = pnand %p218_p8, %p212_p5 }
  0x18   :  { %222 = shalt.err (!%p219_p9)
}
  0x19   :  { %48 = dma.hbm_to_vmem [thread:$0]  %s319_s1, 256, %s43_s20, [#allocation8], %s272_s15, %s272_s15, %s273_s16  }
  0x1a   :  { %263 = dma.done.wait [#allocation5], 256  }
  0x1b   :  { %264 = vsyncadd [#allocation5], 4294967040 }
  0x1c   :  { %265 = dma.done.wait [#allocation8], 256  }
  0x1d   :  { %266 = vsyncadd [#allocation8], 4294967040  ;;  %v79_v0 = vld [vmem:[#allocation4] sm:$0xff]  ;;  %v80_v1 = vld [vmem:[#allocation4 + $0x8] sm:$0xff]  ;;  %s275_s0 = smov [#allocation10]   ;;  %v276_v8 = vmov 0.0  }
  0x1e   :  { %v81_v2 = vld [vmem:[#allocation7] sm:$0xff]  ;;  %v82_v3 = vld [vmem:[#allocation7 + $0x8] sm:$0xff]  ;;  %v87_v4 = vsub.f32 1.0, %v79_v0  ;;  %v88_v5 = vsub.f32 1.0, %v80_v1  ;;  %s154_s24 = sshll.u32 %s275_s0, 4  ;;  %s155_s24 = int_to_ptr.vmem [resolvable:$true] %s154_s24 }
  0x1f   :  { %vm83_vm0 = vcmp.eq.f32.partialorder %v81_v2, 1.0  ;;  %vm84_vm1 = vcmp.eq.f32.partialorder %v82_v3, 1.0  ;;  %s223_s1 = scalar_lea.vmem %s155_s24, 128  ;;  %p228_p11 = scmp.lt.s32.totalorder %s155_s24, %s155_s24 }
  0x20   :  { %v89_v6 = vsel %vm83_vm0, %v79_v0, %v87_v4  ;;  %v90_v7 = vsel %vm84_vm1, %v80_v1, %v88_v5  ;;  %v121_v9 = vsel %vm83_vm0, 1.0, %v276_v8  ;;  %v122_v10 = vsel %vm84_vm1, 1.0, %v276_v8  ;;  %p224_p10 = scmp.ne.s32.totalorder %s155_s24, %s223_s1  ;;  %p229_p12 = scmp.lt.s32.totalorder %s223_s1, %s223_s1 }
  0x21   :  { %179 = vlog2.f32 %v89_v6  ;;  %v128_v11 = vadd.f32 %v122_v10, %v121_v9 }
  0x22   :  { %181 = vlog2.f32 %v90_v7  ;;  %p230_p13 = por %p229_p12, %p228_p11 }
  0x23   :  { %137 = vst [vmem:[#allocation10] sm:$0xff] %v128_v11 }
  0x24   :  { %p231_p0 = pnand %p230_p13, %p224_p10 }
  0x26   :  { %234 = shalt.err (!%p231_p0)
}
  0x27   :  { %157 = dma.vmem_to_hbm [thread:$0]  %s155_s24, 128, %s321_s3, [#allocation11]   ;;  %v101_v12 = vsub.f32 1.0, %v81_v2  ;;  %v102_v13 = vsub.f32 1.0, %v82_v3  ;;  %v95_v14 = vsel %vm83_vm0, %v87_v4, %v79_v0  ;;  %v96_v15 = vsel %vm84_vm1, %v88_v5, %v80_v1 }
  0x28   :  { %v97_v18 = vmul.f32 %v95_v14, %v95_v14  ;;  %v98_v20 = vmul.f32 %v96_v15, %v96_v15  ;;  %vm85_vm2 = vcmp.lt.f32.partialorder %v81_v2, 1.0  ;;  %vm86_vm3 = vcmp.lt.f32.partialorder %v82_v3, 1.0  ;;  %s277_s3 = smov [#allocation9]  }
  0x29   :  { %v103_v16 = vmul.f32 %v101_v12, %v101_v12  ;;  %v104_v17 = vmul.f32 %v102_v13, %v102_v13  ;;  %s144_s27 = sshll.u32 %s277_s3, 4  ;;  %s145_s27 = int_to_ptr.vmem [resolvable:$true] %s144_s27 }
  0x2a   :  { %s243_s28 = scalar_lea.vmem %s145_s27, 128  ;;  %p248_p2 = scmp.lt.s32.totalorder %s145_s27, %s145_s27 }
  0x2b   :  { %v105_v23 = vmul.f32 %v103_v16, %v103_v16  ;;  %v106_v25 = vmul.f32 %v104_v17, %v104_v17  ;;  %p244_p1 = scmp.ne.s32.totalorder %s145_s27, %s243_s28  ;;  %p249_p3 = scmp.lt.s32.totalorder %s243_s28, %s243_s28 }
  0x2d   :  { %p250_p4 = por %p249_p3, %p248_p2 }
  0x2e   :  { %v180_v19 = vpop.eup %179 }
  0x2f   :  { %v182_v21 = vpop.eup %181  ;;  %v92_v22 = vmul.f32 0.6931472, %v180_v19  ;;  %p251_p5 = pnand %p250_p4, %p244_p1 }
  0x30   :  { %v94_v24 = vmul.f32 0.6931472, %v182_v21 }
  0x31   :  { %v99_v26 = vmul.f32 %v97_v18, %v92_v22 }
  0x32   :  { %v100_v27 = vmul.f32 %v98_v20, %v94_v24 }
  0x33   :  { %v107_v28 = vmul.f32 %v105_v23, %v99_v26 }
  0x34   :  { %v108_v29 = vmul.f32 %v106_v25, %v100_v27 }
  0x35   :  { %v109_v30 = vsel %vm85_vm2, %v107_v28, 0.0 }
  0x36   :  { %v110_v31 = vsel %vm86_vm3, %v108_v29, 0.0  ;;  %v111_v32 = vsel %vm83_vm0, %v99_v26, %v109_v30 }
  0x37   :  { %v112_v33 = vsel %vm84_vm1, %v100_v27, %v110_v31 }
  0x38   :  { %v124_v34 = vadd.f32 %v112_v33, %v111_v32 }
  0x3a   :  { %135 = vst [vmem:[#allocation9] sm:$0xff] %v124_v34 }
  0x3b   :  { %254 = shalt.err (!%p251_p5)
}
  0x3c   :  { %147 = dma.vmem_to_hbm [thread:$0]  %s145_s27, 128, %s320_s2, [#allocation6]  }
  0x3d   :  { %267 = dma.done.wait [#allocation6], 128  }
  0x3e   :  { %268 = vsyncadd [#allocation6], 4294967168 }
  0x3f   :  { %269 = dma.done.wait [#allocation11], 128  }
  0x40   :  { %270 = vsyncadd [#allocation11], 4294967168 }
  0x41   :  { %164 = vsyncpa [#allocation5], 1 }
  0x42   :  { %165 = vsyncpa [#allocation8], 1 }
  0x43   :  { %166 = vsyncpa [#allocation6], 1 }
  0x44   :  { %167 = vsyncpa [#allocation11], 1 }

</bundles_post_ra>
